<compile_context>
chip_gen: v5e
topology: v5e:2x2
jax: 0.10.0
libtpu: 0.0.40
codegen_flags: <defaults>
</compile_context>

<pallas_src>
import functools
import math

import jax
import jax.numpy as jnp
from jax.experimental import pallas as pl
from jax.experimental.pallas import tpu as pltpu


def _round_up(v, m):
    return ((v + m - 1) // m) * m


def _fused_gcn_kernel(x_ref, adj_ref, w0_ref, wr_ref, b_ref, out_ref,
                      h_ref, sup_ref, *, num_layers):
    """Grid axis 0 = layer index (sequential).  One grid step = one layer:
         h_{l+1} = act(adj @ (h_l @ W_l) + b_l)
    h is carried in a bf16 VMEM scratch; only the last layer writes out_ref."""
    l = pl.program_id(0)

    # Layer 0 consumes the nf_pad-wide padded input features; later layers
    # consume the fh_pad-wide carried activations.  Both produce the bf16
    # `support = h @ W` tile feeding the adjacency matmul.
    @pl.when(l == 0)
    def _():
        sup_ref[...] = jnp.dot(
            x_ref[...], w0_ref[...],
            preferred_element_type=jnp.float32).astype(jnp.bfloat16)

    @pl.when(l > 0)
    def _():
        sup_ref[...] = jnp.dot(
            h_ref[...], wr_ref[0],
            preferred_element_type=jnp.float32).astype(jnp.bfloat16)

    # adj @ support + b with f32 MXU accumulation.
    out = jnp.dot(adj_ref[...], sup_ref[...],
                  preferred_element_type=jnp.float32) + b_ref[0]

    @pl.when(l < num_layers - 1)
    def _():
        # relu; eval-mode dropout is the identity.
        # NOTE: padded node rows become relu(b) != 0 here.  That is harmless
        # only because the padded *columns* of adj are zero, so real rows never
        # read them — keep adj zero-padded if the packing ever changes.
        h_ref[...] = jnp.maximum(out, 0.0).astype(jnp.bfloat16)

    @pl.when(l == num_layers - 1)
    def _():
        out_ref[...] = 1.0 / (1.0 + jnp.exp(-out))   # exact sigmoid


def pack_gcn_deep_sigmoid_params(params):
    """One-time preprocessing (hoisted out of the per-call path).

    Returns:
      w0:      (nf_pad, fh_pad)      bf16  layer-0 weight (nfeat -> nhid)
      w_rest:  (L, fh_pad, fh_pad)   bf16  layers 1..L-1 weights (slot 0 unused)
      b_stack: (L, 1, fh_pad)        f32   all biases
    Padded rows/cols are zero so real output lanes stay exact.
    """
    num_layers = len(params)
    nfeat, nhid = params[0][0].shape
    nout = params[-1][0].shape[1]
    nf_pad = _round_up(nfeat, 128)
    fh_pad = _round_up(max(nhid, nout), 128)

    w0 = jnp.zeros((nf_pad, fh_pad), jnp.bfloat16)
    w0 = w0.at[:nfeat, :nhid].set(params[0][0].astype(jnp.bfloat16))

    w_rest = jnp.zeros((num_layers, fh_pad, fh_pad), jnp.bfloat16)
    b_stack = jnp.zeros((num_layers, 1, fh_pad), jnp.float32)
    b_stack = b_stack.at[0, 0, :nhid].set(params[0][1].reshape(-1))
    for i in range(1, num_layers):
        w, b = params[i]
        fin, fout = w.shape
        w_rest = w_rest.at[i, :fin, :fout].set(w.astype(jnp.bfloat16))
        b_stack = b_stack.at[i, 0, :fout].set(b.reshape(-1))
    return w0, w_rest, b_stack


def pad_adjacency(adj):
    """One-time: zero-pad adj to (n_pad, n_pad) and cast to bf16.  The zero
    padded columns are what keep junk in the padded node rows of the carried
    activations from leaking into real rows."""
    n = adj.shape[0]
    # TODO(synk): round to 256 on 256x256-MXU generations (v6e/v7x) to avoid a
    # half-empty final K chunk; 128 is the hard layout requirement everywhere.
    n_pad = _round_up(n, 128)
    adj_p = jnp.zeros((n_pad, n_pad), jnp.float32).at[:n, :n].set(adj)
    return adj_p.astype(jnp.bfloat16)


def gcn_deep_sigmoid_forward(x, adj_p, w0, w_rest, b_stack, *, nout,
                             dropout=0.5, training=False):
    """Eval-mode forward of GCNDeepSigmoid as one fused Pallas kernel.
    adj_p / w0 / w_rest / b_stack come from pad_adjacency / pack_gcn_* above."""
    del dropout, training   # inference path: dropout == identity

    n, nfeat = x.shape
    n_pad = adj_p.shape[0]
    nf_pad, fh_pad = w0.shape
    num_layers = w_rest.shape[0]
    assert n <= n_pad and nfeat <= nf_pad

    xp = jnp.zeros((n_pad, nf_pad), jnp.bfloat16)
    xp = xp.at[:n, :nfeat].set(x.astype(jnp.bfloat16))

    # Explicit scoped-VMEM limit: computed footprint + ~30% headroom (capped).
    footprint = (
        n_pad * n_pad * 2            # adj (bf16, single-buffered, resident)
        + n_pad * nf_pad * 2         # x   (bf16, single-buffered)
        + nf_pad * fh_pad * 2        # W0  (bf16, single-buffered)
        + 2 * fh_pad * fh_pad * 2    # W_l (bf16, double-buffered stream)
        + 2 * 8 * fh_pad * 4         # b_l (f32, double-buffered, sublane-padded)
        + n_pad * fh_pad * 4         # out (f32, single-buffered)
        + 2 * n_pad * fh_pad * 2     # h + support scratches (bf16)
        + 2 * n_pad * fh_pad * 4     # f32 matmul temporaries
    )
    vmem_limit = int(min(max(footprint * 1.3, 8 * 1024 * 1024),
                         100 * 1024 * 1024))

    kernel = functools.partial(_fused_gcn_kernel, num_layers=num_layers)
    out_pad = pl.pallas_call(
        kernel,
        out_shape=jax.ShapeDtypeStruct((n_pad, fh_pad), jnp.float32),
        grid_spec=pltpu.PrefetchScalarGridSpec(
            num_scalar_prefetch=0,
            grid=(num_layers,),
            in_specs=[
                pl.BlockSpec((n_pad, nf_pad), lambda l: (0, 0),
                             pipeline_mode=pl.Buffered(1)),              # x (read at l==0)
                pl.BlockSpec((n_pad, n_pad), lambda l: (0, 0),
                             pipeline_mode=pl.Buffered(1)),              # adj (resident)
                pl.BlockSpec((nf_pad, fh_pad), lambda l: (0, 0),
                             pipeline_mode=pl.Buffered(1)),              # W0
                pl.BlockSpec((1, fh_pad, fh_pad), lambda l: (l, 0, 0)),  # W_l (streamed)
                pl.BlockSpec((1, 1, fh_pad), lambda l: (l, 0, 0)),       # b_l
            ],
            out_specs=pl.BlockSpec((n_pad, fh_pad), lambda l: (0, 0),
                                   pipeline_mode=pl.Buffered(1)),        # written last layer
            scratch_shapes=[
                pltpu.VMEM((n_pad, fh_pad), jnp.bfloat16),   # carried activations h
                pltpu.VMEM((n_pad, fh_pad), jnp.bfloat16),   # support = h @ W
            ],
        ),
        compiler_params=pltpu.CompilerParams(
            dimension_semantics=("arbitrary",),   # layers are sequential
            vmem_limit_bytes=vmem_limit,
        ),
    )(xp, adj_p, w0, w_rest, b_stack)

    # Slice off padded rows/lanes before flatten (padded lanes hold sigmoid of
    # junk and must not leak into the result).
    return out_pad[:n, :nout].reshape(-1)


def init_gcn_deep_sigmoid_params(key, nfeat, nhid, nout, nlayers):
    """Mirrors GraphConvolution.reset_parameters:
    uniform(-1/sqrt(out_features), 1/sqrt(out_features)) for W and b."""
    dims = [(nfeat, nhid)] + [(nhid, nhid)] * (nlayers - 2) + [(nhid, nout)]
    params = []
    for (fin, fout) in dims:
        key, kw, kb = jax.random.split(key, 3)
        stdv = 1.0 / math.sqrt(fout)
        w = jax.random.uniform(kw, (fin, fout), jnp.float32, -stdv, stdv)
        b = jax.random.uniform(kb, (1, fout), jnp.float32, -stdv, stdv)
        params.append((w, b))
    return params


if __name__ == "__main__":
    # Small synthetic problem: 16 nodes, 8 input features, hidden 32,
    # nout=1 (probability per node), 4 GCN layers.
    N, NFEAT, NHID, NOUT, NLAYERS = 16, 8, 32, 1, 4

    key = jax.random.PRNGKey(0)
    kx, kadj, kp = jax.random.split(key, 3)

    x = jax.random.normal(kx, (N, NFEAT), dtype=jnp.float32)

    # Symmetric normalized adjacency with self loops (typical GCN input).
    a = (jax.random.uniform(kadj, (N, N)) < 0.3).astype(jnp.float32)
    a = jnp.maximum(a, a.T)
    a = a + jnp.eye(N, dtype=jnp.float32)
    deg = jnp.sum(a, axis=1)
    d_inv_sqrt = 1.0 / jnp.sqrt(deg)
    adj = a * d_inv_sqrt[:, None] * d_inv_sqrt[None, :]

    params = init_gcn_deep_sigmoid_params(kp, NFEAT, NHID, NOUT, NLAYERS)

    # One-time preprocessing, hoisted out of the per-call (jitted) path.
    w0_p, wr_p, b_p = pack_gcn_deep_sigmoid_params(params)
    adj_p = pad_adjacency(adj)

    fwd = jax.jit(functools.partial(gcn_deep_sigmoid_forward, nout=NOUT))
    out = jax.block_until_ready(fwd(x, adj_p, w0_p, wr_p, b_p))

    # Pure-JAX f32 reference (eval mode) for a correctness sanity check.
    h = x
    for i, (w, b) in enumerate(params):
        h = adj @ (h @ w) + b
        if i < NLAYERS - 1:
            h = jnp.maximum(h, 0.0)
    ref = (1.0 / (1.0 + jnp.exp(-h))).reshape(-1)

    assert out.shape == (N * NOUT,)
    assert bool(jnp.all(jnp.isfinite(out)))
    assert bool(jnp.all((out >= 0.0) & (out <= 1.0)))
    # bf16 MXU inputs => small drift vs f32 reference; tolerance reflects that.
    assert bool(jnp.allclose(out, ref, atol=3e-2, rtol=3e-2)), \
        float(jnp.max(jnp.abs(out - ref)))
    print("KERNEL_OK")
</pallas_src>

<mosaic_0001>
module attributes {stable_mosaic.version = 11 : i64} {
  func.func @_fused_gcn_kernel(%arg0: i32, %arg1: memref<128x128xbf16, #tpu.memory_space<vmem>>, %arg2: memref<128x128xbf16, #tpu.memory_space<vmem>>, %arg3: memref<128x128xbf16, #tpu.memory_space<vmem>>, %arg4: memref<1x128x128xbf16, #tpu.memory_space<vmem>>, %arg5: memref<1x1x128xf32, #tpu.memory_space<vmem>>, %arg6: memref<128x128xf32, #tpu.memory_space<vmem>>, %arg7: memref<128x128xbf16, #tpu.memory_space<vmem>>, %arg8: memref<128x128xbf16, #tpu.memory_space<vmem>>) attributes {dimension_semantics = [#tpu.dimension_semantics<arbitrary>], iteration_bounds = array<i64: 4>, scalar_prefetch = 0 : i64, scratch_operands = 2 : i64, tpu.core_type = #tpu.core_type<tc>, window_params = [{pipeline_mode = #tpu.pipeline_mode<synchronous>, transform_indices = @transform_0, window_bounds = array<i64: 128, 128>}, {pipeline_mode = #tpu.pipeline_mode<synchronous>, transform_indices = @transform_1, window_bounds = array<i64: 128, 128>}, {pipeline_mode = #tpu.pipeline_mode<synchronous>, transform_indices = @transform_2, window_bounds = array<i64: 128, 128>}, {transform_indices = @transform_3, window_bounds = array<i64: 1, 128, 128>}, {transform_indices = @transform_4, window_bounds = array<i64: 1, 1, 128>}, {pipeline_mode = #tpu.pipeline_mode<synchronous>, transform_indices = @transform_5, window_bounds = array<i64: 128, 128>}]} {
    %c0_i32 = arith.constant 0 : i32
    %0 = arith.cmpi eq, %arg0, %c0_i32 : i32
    %1 = arith.extui %0 : i1 to i32
    %c0_i32_0 = arith.constant 0 : i32
    %2 = arith.cmpi ne, %1, %c0_i32_0 : i32
    scf.if %2 {
      %c0_12 = arith.constant 0 : index
      %c0_13 = arith.constant 0 : index
      %19 = vector.load %arg1[%c0_12, %c0_13] : memref<128x128xbf16, #tpu.memory_space<vmem>>, vector<128x128xbf16>
      %c0_14 = arith.constant 0 : index
      %c0_15 = arith.constant 0 : index
      %20 = vector.load %arg3[%c0_14, %c0_15] : memref<128x128xbf16, #tpu.memory_space<vmem>>, vector<128x128xbf16>
      %cst_16 = arith.constant dense<0.000000e+00> : vector<128x128xf32>
      %21 = tpu.matmul %19, %20, %cst_16 {dimension_numbers = #tpu.dot_dimension_numbers<[1], [0], [0], [1], [0, 0, 1, 1], [], []>} : vector<128x128xbf16>, vector<128x128xbf16>, vector<128x128xf32> -> vector<128x128xf32>
      %22 = arith.truncf %21 : vector<128x128xf32> to vector<128x128xbf16>
      %c0_17 = arith.constant 0 : index
      %c0_18 = arith.constant 0 : index
      %23 = vector.load %arg8[%c0_17, %c0_18] : memref<128x128xbf16, #tpu.memory_space<vmem>>, vector<128x128xbf16>
      tpu.vector_store %arg8[%c0_17, %c0_18], %22 {strides = array<i32>} : memref<128x128xbf16, #tpu.memory_space<vmem>>, vector<128x128xbf16>,
    } else {
    }
    %c0_i32_1 = arith.constant 0 : i32
    %3 = arith.cmpi sgt, %arg0, %c0_i32_1 : i32
    %4 = arith.extui %3 : i1 to i32
    %c0_i32_2 = arith.constant 0 : i32
    %5 = arith.cmpi ne, %4, %c0_i32_2 : i32
    scf.if %5 {
      %c0_12 = arith.constant 0 : index
      %c0_13 = arith.constant 0 : index
      %19 = vector.load %arg7[%c0_12, %c0_13] : memref<128x128xbf16, #tpu.memory_space<vmem>>, vector<128x128xbf16>
      %c0_14 = arith.constant 0 : index
      %c0_15 = arith.constant 0 : index
      %c0_16 = arith.constant 0 : index
      %20 = vector.load %arg4[%c0_14, %c0_15, %c0_16] : memref<1x128x128xbf16, #tpu.memory_space<vmem>>, vector<1x128x128xbf16>
      %21 = vector.shape_cast %20 : vector<1x128x128xbf16> to vector<128x128xbf16>
      %cst_17 = arith.constant dense<0.000000e+00> : vector<128x128xf32>
      %22 = tpu.matmul %19, %21, %cst_17 {dimension_numbers = #tpu.dot_dimension_numbers<[1], [0], [0], [1], [0, 0, 1, 1], [], []>} : vector<128x128xbf16>, vector<128x128xbf16>, vector<128x128xf32> -> vector<128x128xf32>
      %23 = arith.truncf %22 : vector<128x128xf32> to vector<128x128xbf16>
      %c0_18 = arith.constant 0 : index
      %c0_19 = arith.constant 0 : index
      %24 = vector.load %arg8[%c0_18, %c0_19] : memref<128x128xbf16, #tpu.memory_space<vmem>>, vector<128x128xbf16>
      tpu.vector_store %arg8[%c0_18, %c0_19], %23 {strides = array<i32>} : memref<128x128xbf16, #tpu.memory_space<vmem>>, vector<128x128xbf16>,
    } else {
    }
    %c0 = arith.constant 0 : index
    %c0_3 = arith.constant 0 : index
    %6 = vector.load %arg2[%c0, %c0_3] : memref<128x128xbf16, #tpu.memory_space<vmem>>, vector<128x128xbf16>
    %c0_4 = arith.constant 0 : index
    %c0_5 = arith.constant 0 : index
    %7 = vector.load %arg8[%c0_4, %c0_5] : memref<128x128xbf16, #tpu.memory_space<vmem>>, vector<128x128xbf16>
    %cst = arith.constant dense<0.000000e+00> : vector<128x128xf32>
    %8 = tpu.matmul %6, %7, %cst {dimension_numbers = #tpu.dot_dimension_numbers<[1], [0], [0], [1], [0, 0, 1, 1], [], []>} : vector<128x128xbf16>, vector<128x128xbf16>, vector<128x128xf32> -> vector<128x128xf32>
    %c0_6 = arith.constant 0 : index
    %c0_7 = arith.constant 0 : index
    %c0_8 = arith.constant 0 : index
    %9 = vector.load %arg5[%c0_6, %c0_7, %c0_8] : memref<1x1x128xf32, #tpu.memory_space<vmem>>, vector<1x1x128xf32>
    %10 = vector.shape_cast %9 : vector<1x1x128xf32> to vector<1x128xf32>
    %11 = vector.broadcast %10 : vector<1x128xf32> to vector<128x128xf32>
    %12 = arith.addf %8, %11 : vector<128x128xf32>
    %c3_i32 = arith.constant 3 : i32
    %13 = arith.cmpi slt, %arg0, %c3_i32 : i32
    %14 = arith.extui %13 : i1 to i32
    %c0_i32_9 = arith.constant 0 : i32
    %15 = arith.cmpi ne, %14, %c0_i32_9 : i32
    scf.if %15 {
      %cst_12 = arith.constant 0.000000e+00 : f32
      %19 = vector.broadcast %cst_12 : f32 to vector<128x128xf32>
      %20 = arith.maximumf %12, %19 : vector<128x128xf32>
      %21 = arith.truncf %20 : vector<128x128xf32> to vector<128x128xbf16>
      %c0_13 = arith.constant 0 : index
      %c0_14 = arith.constant 0 : index
      %22 = vector.load %arg7[%c0_13, %c0_14] : memref<128x128xbf16, #tpu.memory_space<vmem>>, vector<128x128xbf16>
      tpu.vector_store %arg7[%c0_13, %c0_14], %21 {strides = array<i32>} : memref<128x128xbf16, #tpu.memory_space<vmem>>, vector<128x128xbf16>,
    } else {
    }
    %c3_i32_10 = arith.constant 3 : i32
    %16 = arith.cmpi eq, %arg0, %c3_i32_10 : i32
    %17 = arith.extui %16 : i1 to i32
    %c0_i32_11 = arith.constant 0 : i32
    %18 = arith.cmpi ne, %17, %c0_i32_11 : i32
    scf.if %18 {
      %cst_12 = arith.constant 0.000000e+00 : f32
      %19 = vector.broadcast %cst_12 : f32 to vector<128x128xf32>
      %20 = arith.subf %19, %12 : vector<128x128xf32>
      %21 = math.exp %20 : vector<128x128xf32>
      %cst_13 = arith.constant 1.000000e+00 : f32
      %22 = vector.broadcast %cst_13 : f32 to vector<128x128xf32>
      %23 = arith.addf %22, %21 : vector<128x128xf32>
      %cst_14 = arith.constant 1.000000e+00 : f32
      %24 = vector.broadcast %cst_14 : f32 to vector<128x128xf32>
      %25 = arith.divf %24, %23 : vector<128x128xf32>
      %c0_15 = arith.constant 0 : index
      %c0_16 = arith.constant 0 : index
      %26 = vector.load %arg6[%c0_15, %c0_16] : memref<128x128xf32, #tpu.memory_space<vmem>>, vector<128x128xf32>
      tpu.vector_store %arg6[%c0_15, %c0_16], %25 {strides = array<i32>} : memref<128x128xf32, #tpu.memory_space<vmem>>, vector<128x128xf32>,
    } else {
    }
    return
  }
  func.func @transform_0(%arg0: i32) -> (i32, i32) {
    %c0_i32 = arith.constant 0 : i32
    %c0_i32_0 = arith.constant 0 : i32
    %c0_i32_1 = arith.constant 0 : i32
    return %c0_i32, %c0_i32_0 : i32, i32
  }
  func.func @transform_1(%arg0: i32) -> (i32, i32) {
    %c0_i32 = arith.constant 0 : i32
    %c0_i32_0 = arith.constant 0 : i32
    %c0_i32_1 = arith.constant 0 : i32
    return %c0_i32, %c0_i32_0 : i32, i32
  }
  func.func @transform_2(%arg0: i32) -> (i32, i32) {
    %c0_i32 = arith.constant 0 : i32
    %c0_i32_0 = arith.constant 0 : i32
    %c0_i32_1 = arith.constant 0 : i32
    return %c0_i32, %c0_i32_0 : i32, i32
  }
  func.func @transform_3(%arg0: i32) -> (i32, i32, i32) {
    %c0_i32 = arith.constant 0 : i32
    %c0_i32_0 = arith.constant 0 : i32
    %c0_i32_1 = arith.constant 0 : i32
    return %arg0, %c0_i32, %c0_i32_0 : i32, i32, i32
  }
  func.func @transform_4(%arg0: i32) -> (i32, i32, i32) {
    %c0_i32 = arith.constant 0 : i32
    %c0_i32_0 = arith.constant 0 : i32
    %c0_i32_1 = arith.constant 0 : i32
    return %arg0, %c0_i32, %c0_i32_0 : i32, i32, i32
  }
  func.func @transform_5(%arg0: i32) -> (i32, i32) {
    %c0_i32 = arith.constant 0 : i32
    %c0_i32_0 = arith.constant 0 : i32
    %c0_i32_1 = arith.constant 0 : i32
    return %c0_i32, %c0_i32_0 : i32, i32
  }
}

</mosaic_0001>

<bundles_post_ra>
// kernel: gcn_deep_sigmoid_forward.1
= control target key start
LH: loop header
LB: loop body
LE: loop exit
PB: predicated region body
PF: predicated region fallthrough
CT: control target
= control target key end

     0   :  { %10 = vsyncpa [#allocation5], 0  ;;  %s2600_s0 = inlined_call_operand.vmem [shape: bf16[128,128], index: 0, kind: input, shape index: {}]   ;;  %s2601_s1 = inlined_call_operand.vmem [shape: bf16[128,128], index: 1, kind: input, shape index: {}]   ;;  %s2602_s2 = inlined_call_operand.hbm [shape: bf16[128,128], index: 2, kind: input, shape index: {}]   ;;  %s2603_s3 = inlined_call_operand.hbm [shape: bf16[4,128,128], index: 3, kind: input, shape index: {}]   ;;  %s2604_s4 = inlined_call_operand.vmem [shape: f32[4,1,128], index: 4, kind: input, shape index: {}]   ;;  %s2605_s5 = inlined_call_operand.vmem [shape: f32[128,128], index: 5, kind: output, shape index: {}]  }
   0x1   :  { %11 = vsyncpa [#allocation7], 0 }
   0x2   :  { %13 = vsyncpa [#allocation7 + $0x1], 0  ;;  %s2026_s18 = smov 0   ;;  %s2028_s19 = smov 0  }
   0x3   :  { %s2030_s20 = smov 0   ;;  %s2032_s21 = smov 0  }
   0x4 LB: > { %s2045_s22 = sadd.s32 4294967295, %s1991_s21   ;;  %p102_p0 = scmp.ne.s32.totalorder %s1983_s19, %s1979_s18  ;;  %s1991_s21 = sphi %s2032_s21, %s2660_s21   ;;  %s1987_s20 = sphi %s2030_s20, %s2659_s20   ;;  %s1983_s19 = sphi %s2028_s19, %s2658_s19   ;;  %s1979_s18 = sphi %s2026_s18, %s2657_s18  }
   0x5   : > { %p103_p1 = scmp.eq.s32.totalorder %s2045_s22, 0  ;;  %p1307_p2 = scmp.ge.s32.totalorder %s1991_s21, 1 }
   0x6   : > { %p160_p3 = scmp.lt.s32.totalorder %s1991_s21, 5  ;;  %p1308_p4 = scmp.ne.s32.totalorder %s2045_s22, 0 }
   0x7   : > { %p2054_p5 = por %p103_p1, %p102_p0  ;;  %s177_s26 = sshll.u32 %s2602_s2, 4  ;;  %s178_s26 = int_to_ptr.hbm [resolvable:$true] %s177_s26 }
   0x8   : > { %p2061_p6 = pnand %p1307_p2, %p160_p3  ;;  %s1993_s28 = smov [#allocation4]  }
   0x9   : > { %s179_s29 = sshll.u32 %s1993_s28, 4  ;;  %s2070_s30 = sadd.s32 1, %s1991_s21   ;;  %s180_s29 = int_to_ptr.vmem [resolvable:$true] %s179_s29 }
   0xa   : > { %p1782_p7 = pneg %p2061_p6  ;;  %s1994_s6 = smov 64  }
   0xb   : > { %s1995_s7 = smov 4   ;;  %s86_s8 = ssub.s32 %s1991_s21, %s2070_s30 }
   0xc   : > { %p1783_p8 = pnand %p1782_p7, %p103_p1  ;;  %s89_s9 = sadd.s32 1, %s1987_s20 }
   0xd   : > { %p87_p9 = scmp.eq.s32.totalorder %s86_s8, 0  ;;  %p96_p10 = scmp.ne.s32.totalorder %s1987_s20, %s1983_s19 }
   0xe   : > { %1785 = dma.hbm_to_vmem [thread:$0]  (!%p1783_p8), %s178_s26, 1024, %s180_s29, [#allocation5], %s1994_s6, %s1994_s6, %s1995_s7  }
   0xf   : > { %p97_p11 = scmp.eq.s32.totalorder %s1991_s21, 0  ;;  %p1791_p12 = scmp.lt.s32.totalorder %s1991_s21, 4 }
  0x10   : > { %s2083_s10 = scalar_select %p87_p9, %s1987_s20, %s89_s9  }
  0x11   : > { %p98_p13 = por %p97_p11, %p96_p10  ;;  %s193_s11 = sand.u32 1, %s1987_s20  }
  0x12   : > { %s1310_s12 = sshll.u32 %s193_s11, 6  ;;  %s1514_s13 = sshll.u32 %s1991_s21, 6 }
  0x13   : > { %s202_s16 = scalar_lea.hbm %s2603_s3, %s1514_s13  ;;  %s197_s17 = scalar_lea.vmem [#allocation6], %s1310_s12 }
  0x14   : > { %s205_s18 = sshll.u32 %s197_s17, 4  ;;  %s203_s24 = sshll.u32 %s202_s16, 4  ;;  %s206_s18 = int_to_ptr.vmem [resolvable:$true] %s205_s18  ;;  %s204_s24 = int_to_ptr.hbm [resolvable:$true] %s203_s24 }
  0x15   : > { %p2090_p0 = pnand %p1791_p12, %p98_p13  ;;  %s194_s26 = scalar_lea.sflag [#allocation7], %s193_s11 }
  0x16   : > { %s1923_s28 = sshra.s32 %s204_s24, 4  ;;  %s1930_s9 = scalar_lea.hbm %s2603_s3, 256  ;;  %s1924_s28 = int_to_ptr.hbm [resolvable:$true] %s1923_s28 }
  0x17   : > { %s1925_s29 = scalar_lea.hbm %s1924_s28, 64  ;;  %p1927_p3 = pneg %p2090_p0 }
  0x18   : > { %p1926_p2 = scmp.ne.s32.totalorder %s1924_s28, %s1925_s29  ;;  %p1931_p9 = scmp.lt.s32.totalorder %s1924_s28, %s2603_s3 }
  0x19   : > { %p1932_p10 = scmp.lt.s32.totalorder %s1930_s9, %s1925_s29 }
  0x1a   : > { %p1928_p7 = pnand %p1927_p3, %p1926_p2 }
  0x1b   : > { %p1933_p11 = por %p1932_p10, %p1931_p9 }
  0x1c   : > { %p1929_p8 = pneg %p1928_p7 }
  0x1e   : > { %p1934_p12 = pnand %p1933_p11, %p1929_p8 }
  0x20   : > { %1937 = shalt.err (!%p1934_p12)
}
  0x21   : > { %1789 = dma.hbm_to_vmem [thread:$0]  (!%p2090_p0), %s204_s24, 1024, %s206_s18, %s194_s26, %s1994_s6, %s1994_s6, %s1995_s7  }
  0x22   : > { %223 = sbr.rel (%p2061_p6) target bundleno = 735 (0x2df), region = 40 }
  0x27   : > { %1970 = dma.done.wait (%p103_p1), [#allocation5], 1024  }
  0x28   : > { %1972 = vsyncadd (%p103_p1), [#allocation5], 4294966272  ;;  %s230_s11 = sand.u32 1, %s1983_s19  }
  0x29   : > { %s1315_s14 = sshll.u32 %s230_s11, 6  ;;  %s231_s15 = scalar_lea.sflag [#allocation7], %s230_s11 }
  0x2a   : > { %s2114_s16 = scalar_lea.vmem [#allocation6], %s1315_s14 }
  0x2b   : > { %1974 = dma.done.wait (%p2054_p5), %s231_s15, 1024  }
  0x2c   : > { %1976 = vsyncadd (%p2054_p5), %s231_s15, 4294966272  ;;  %p260_p6 = scmp.lt.s32.totalorder %s2045_s22, 3  ;;  %266 = sbr.rel (%p1308_p4) target bundleno = 242 (0xf2), region = 52 }
  0x2e   : > { %s2122_s27 = scalar_select %p260_p6, %s2045_s22, 3 }
  0x30   : > { %s262_s17 = scalar_lea.vmem %s2604_s4, %s2122_s27 }
  0x31   : > { %v1530_v0 = vld [vmem:[#allocation4 + $0x38] sm:$0xff]  ;;  %v1529_v1 = vld [vmem:[#allocation4 + $0x30] sm:$0xff]  ;;  %v1528_v2 = vld [vmem:[#allocation4 + $0x28] sm:$0xff] }
  0x32   : > { %395 = vmatpush.bf16.msra.mxu0 %v1530_v0  ;;  %1704 = vmatpush.bf16.msra.mxu1 %v1530_v0  ;;  %v1527_v3 = vld [vmem:[#allocation4 + $0x20] sm:$0xff]  ;;  %v1526_v4 = vld [vmem:[#allocation4 + $0x18] sm:$0xff]  ;;  %v1525_v5 = vld [vmem:[#allocation4 + $0x10] sm:$0xff] }
  0x33   : > { %1705 = vmatpush.bf16.msra.mxu2 %v1530_v0  ;;  %1706 = vmatpush.bf16.msra.mxu3 %v1530_v0  ;;  %v1524_v6 = vld [vmem:[#allocation4 + $0x8] sm:$0xff]  ;;  %v1523_v7 = vld [vmem:[#allocation4] sm:$0xff]  ;;  %v1517_v9 = vld [vmem:[%s2600_s0 + $0x10] sm:$0xff] }
  0x34   : > { %v1515_v8 = vld [vmem:[%s2600_s0] sm:$0xff]  ;;  %v1521_v11 = vld [vmem:[%s2600_s0 + $0x30] sm:$0xff]  ;;  %v1516_v12 = vld [vmem:[%s2600_s0 + $0x8] sm:$0xff] }
  0x35   : > { %v1519_v10 = vld [vmem:[%s2600_s0 + $0x20] sm:$0xff]  ;;  %v1518_v13 = vld [vmem:[%s2600_s0 + $0x18] sm:$0xff]  ;;  %v1520_v14 = vld [vmem:[%s2600_s0 + $0x28] sm:$0xff] }
  0x36   : > { %396 = vmatpush.bf16.msra.mxu0 %v1529_v1  ;;  %1707 = vmatpush.bf16.msra.mxu1 %v1529_v1  ;;  %v1522_v15 = vld [vmem:[%s2600_s0 + $0x38] sm:$0xff] }
  0x37   : > { %1708 = vmatpush.bf16.msra.mxu2 %v1529_v1  ;;  %1709 = vmatpush.bf16.msra.mxu3 %v1529_v1 }
  0x3a   : > { %397 = vmatpush.bf16.msra.mxu0 %v1528_v2  ;;  %1710 = vmatpush.bf16.msra.mxu1 %v1528_v2 }
  0x3b   : > { %1711 = vmatpush.bf16.msra.mxu2 %v1528_v2  ;;  %1712 = vmatpush.bf16.msra.mxu3 %v1528_v2 }
  0x3e   : > { %398 = vmatpush.bf16.msra.mxu0 %v1527_v3  ;;  %1713 = vmatpush.bf16.msra.mxu1 %v1527_v3 }
  0x3f   : > { %1714 = vmatpush.bf16.msra.mxu2 %v1527_v3  ;;  %1715 = vmatpush.bf16.msra.mxu3 %v1527_v3 }
  0x42   : > { %399 = vmatpush.bf16.msra.mxu0 %v1526_v4  ;;  %1716 = vmatpush.bf16.msra.mxu1 %v1526_v4 }
  0x43   : > { %1717 = vmatpush.bf16.msra.mxu2 %v1526_v4  ;;  %1718 = vmatpush.bf16.msra.mxu3 %v1526_v4 }
  0x46   : > { %400 = vmatpush.bf16.msra.mxu0 %v1525_v5  ;;  %1719 = vmatpush.bf16.msra.mxu1 %v1525_v5 }
  0x47   : > { %1720 = vmatpush.bf16.msra.mxu2 %v1525_v5  ;;  %1721 = vmatpush.bf16.msra.mxu3 %v1525_v5 }
  0x4a   : > { %401 = vmatpush.bf16.msra.mxu0 %v1524_v6  ;;  %1722 = vmatpush.bf16.msra.mxu1 %v1524_v6 }
  0x4b   : > { %1723 = vmatpush.bf16.msra.mxu2 %v1524_v6  ;;  %1724 = vmatpush.bf16.msra.mxu3 %v1524_v6 }
  0x4e   : > { %402 = vmatpush.bf16.msra.mxu0 %v1523_v7  ;;  %1725 = vmatpush.bf16.msra.mxu1 %v1523_v7 }
  0x4f   : > { %1726 = vmatpush.bf16.msra.mxu2 %v1523_v7  ;;  %1727 = vmatpush.bf16.msra.mxu3 %v1523_v7 }
  0x51   : > { %403 = vmatmul.bf16.vlgmr.msra.gmra.mxu0 %v1515_v8  ;;  %413 = vmatmul.bf16.vlgmr.msra.gmra.mxu1 %v1517_v9 }
  0x52   : > { %423 = vmatmul.bf16.vlgmr.msra.gmra.mxu2 %v1519_v10  ;;  %433 = vmatmul.bf16.vlgmr.msra.gmra.mxu3 %v1521_v11 }
  0x61   : > { %408 = vmatmul.bf16.gmra.mxu0 %v1516_v12  ;;  %418 = vmatmul.bf16.gmra.mxu1 %v1518_v13 }
  0x62   : > { %428 = vmatmul.bf16.gmra.mxu2 %v1520_v14  ;;  %438 = vmatmul.bf16.gmra.mxu3 %v1522_v15 }
  0xce   : > { %v404_v16 = vpop.f32.mrf.mxu0  ;;  %v414_v17 = vpop.f32.mrf.mxu1 }
  0xd5   : > { %v424_v18 = vpop.f32.mrf.mxu2  ;;  %v434_v19 = vpop.f32.mrf.mxu3 }
  0xd6   : > { %v406_v20 = vpop.f32.mrf.mxu0  ;;  %v416_v21 = vpop.f32.mrf.mxu1 }
  0xd7   : > { %v1566_v22 = vpack.c.bf16 %v406_v20, %v404_v16  ;;  %v1576_v23 = vpack.c.bf16 %v416_v21, %v414_v17 }
  0xd9   : > { %1567 = vst [vmem:[#allocation3] sm:$0xff] %v1566_v22  }
  0xda   : > { %1684 = vst [vmem:[#allocation3 + $0x10] sm:$0xff] %v1576_v23  }
  0xdd   : > { %v426_v24 = vpop.f32.mrf.mxu2  ;;  %v436_v25 = vpop.f32.mrf.mxu3 }
  0xde   : > { %v1586_v26 = vpack.c.bf16 %v426_v24, %v424_v18  ;;  %v1596_v27 = vpack.c.bf16 %v436_v25, %v434_v19  ;;  %v409_v28 = vpop.f32.mrf.mxu0  ;;  %v419_v29 = vpop.f32.mrf.mxu1 }
  0xe0   : > { %1686 = vst [vmem:[#allocation3 + $0x28] sm:$0xff] %v1586_v26  }
  0xe1   : > { %1688 = vst [vmem:[#allocation3 + $0x30] sm:$0xff] %v1596_v27  }
  0xe5   : > { %v429_v30 = vpop.f32.mrf.mxu2  ;;  %v439_v31 = vpop.f32.mrf.mxu3 }
  0xe6   : > { %v411_v32 = vpop.f32.mrf.mxu0  ;;  %v421_v33 = vpop.f32.mrf.mxu1 }
  0xe7   : > { %v1571_v34 = vpack.c.bf16 %v411_v32, %v409_v28  ;;  %v1581_v35 = vpack.c.bf16 %v421_v33, %v419_v29 }
  0xe9   : > { %1683 = vst [vmem:[#allocation3 + $0x18] sm:$0xff] %v1571_v34  }
  0xea   : > { %1685 = vst [vmem:[#allocation3 + $0x20] sm:$0xff] %v1581_v35  }
  0xed   : > { %v431_v36 = vpop.f32.mrf.mxu2  ;;  %v441_v37 = vpop.f32.mrf.mxu3 }
  0xee   : > { %v1591_v38 = vpack.c.bf16 %v431_v36, %v429_v30  ;;  %v1601_v39 = vpack.c.bf16 %v441_v37, %v439_v31 }
  0xf0   : > { %1687 = vst [vmem:[#allocation3 + $0x8] sm:$0xff] %v1591_v38  }
  0xf1   : > { %1689 = vst [vmem:[#allocation3 + $0x38] sm:$0xff] %v1601_v39  }
  0xf2 PF: > { %p1381_p1 = scmp.le.s32.totalorder %s2045_s22, 0 }
  0xf4   : > { %479 = sbr.rel (%p1381_p1) target bundleno = 442 (0x1ba), region = 56 }
  0xf9   : > { %v1546_v40 = vld [vmem:[%s2114_s16 + $0x38] sm:$0xff]  ;;  %v1545_v41 = vld [vmem:[%s2114_s16 + $0x30] sm:$0xff]  ;;  %v1544_v42 = vld [vmem:[%s2114_s16 + $0x28] sm:$0xff] }
  0xfa   : > { %608 = vmatpush.bf16.msra.mxu0 %v1546_v40  ;;  %1728 = vmatpush.bf16.msra.mxu1 %v1546_v40  ;;  %v1543_v43 = vld [vmem:[%s2114_s16 + $0x20] sm:$0xff]  ;;  %v1542_v44 = vld [vmem:[%s2114_s16 + $0x18] sm:$0xff]  ;;  %v1541_v45 = vld [vmem:[%s2114_s16 + $0x10] sm:$0xff] }
  0xfb   : > { %1729 = vmatpush.bf16.msra.mxu2 %v1546_v40  ;;  %1730 = vmatpush.bf16.msra.mxu3 %v1546_v40  ;;  %v1540_v46 = vld [vmem:[%s2114_s16 + $0x8] sm:$0xff]  ;;  %v1539_v47 = vld [vmem:[%s2114_s16] sm:$0xff]  ;;  %v1531_v48 = vld [vmem:[#allocation2 + $0x30] sm:$0xff] }
  0xfc   : > { %v1533_v49 = vld [vmem:[#allocation2 + $0x18] sm:$0xff]  ;;  %v1535_v50 = vld [vmem:[#allocation2 + $0x8] sm:$0xff]  ;;  %v1532_v52 = vld [vmem:[#allocation2] sm:$0xff] }
  0xfd   : > { %v1537_v51 = vld [vmem:[#allocation2 + $0x28] sm:$0xff]  ;;  %v1534_v53 = vld [vmem:[#allocation2 + $0x10] sm:$0xff]  ;;  %v1536_v54 = vld [vmem:[#allocation2 + $0x20] sm:$0xff] }
  0xfe   : > { %609 = vmatpush.bf16.msra.mxu0 %v1545_v41  ;;  %1731 = vmatpush.bf16.msra.mxu1 %v1545_v41  ;;  %v1538_v55 = vld [vmem:[#allocation2 + $0x38] sm:$0xff] }
  0xff   : > { %1732 = vmatpush.bf16.msra.mxu2 %v1545_v41  ;;  %1733 = vmatpush.bf16.msra.mxu3 %v1545_v41 }
 0x102   : > { %610 = vmatpush.bf16.msra.mxu0 %v1544_v42  ;;  %1734 = vmatpush.bf16.msra.mxu1 %v1544_v42 }
 0x103   : > { %1735 = vmatpush.bf16.msra.mxu2 %v1544_v42  ;;  %1736 = vmatpush.bf16.msra.mxu3 %v1544_v42 }
 0x106   : > { %611 = vmatpush.bf16.msra.mxu0 %v1543_v43  ;;  %1737 = vmatpush.bf16.msra.mxu1 %v1543_v43 }
 0x107   : > { %1738 = vmatpush.bf16.msra.mxu2 %v1543_v43  ;;  %1739 = vmatpush.bf16.msra.mxu3 %v1543_v43 }
 0x10a   : > { %612 = vmatpush.bf16.msra.mxu0 %v1542_v44  ;;  %1740 = vmatpush.bf16.msra.mxu1 %v1542_v44 }
 0x10b   : > { %1741 = vmatpush.bf16.msra.mxu2 %v1542_v44  ;;  %1742 = vmatpush.bf16.msra.mxu3 %v1542_v44 }
 0x10e   : > { %613 = vmatpush.bf16.msra.mxu0 %v1541_v45  ;;  %1743 = vmatpush.bf16.msra.mxu1 %v1541_v45 }
 0x10f   : > { %1744 = vmatpush.bf16.msra.mxu2 %v1541_v45  ;;  %1745 = vmatpush.bf16.msra.mxu3 %v1541_v45 }
 0x112   : > { %614 = vmatpush.bf16.msra.mxu0 %v1540_v46  ;;  %1746 = vmatpush.bf16.msra.mxu1 %v1540_v46 }
 0x113   : > { %1747 = vmatpush.bf16.msra.mxu2 %v1540_v46  ;;  %1748 = vmatpush.bf16.msra.mxu3 %v1540_v46 }
 0x116   : > { %615 = vmatpush.bf16.msra.mxu0 %v1539_v47  ;;  %1749 = vmatpush.bf16.msra.mxu1 %v1539_v47 }
 0x117   : > { %1750 = vmatpush.bf16.msra.mxu2 %v1539_v47  ;;  %1751 = vmatpush.bf16.msra.mxu3 %v1539_v47 }
 0x119   : > { %616 = vmatmul.bf16.vlgmr.msra.gmra.mxu0 %v1531_v48  ;;  %626 = vmatmul.bf16.vlgmr.msra.gmra.mxu1 %v1533_v49 }
 0x11a   : > { %636 = vmatmul.bf16.vlgmr.msra.gmra.mxu2 %v1535_v50  ;;  %646 = vmatmul.bf16.vlgmr.msra.gmra.mxu3 %v1537_v51 }
 0x129   : > { %621 = vmatmul.bf16.gmra.mxu0 %v1532_v52  ;;  %631 = vmatmul.bf16.gmra.mxu1 %v1534_v53 }
 0x12a   : > { %641 = vmatmul.bf16.gmra.mxu2 %v1536_v54  ;;  %651 = vmatmul.bf16.gmra.mxu3 %v1538_v55 }
 0x196   : > { %v617_v56 = vpop.f32.mrf.mxu0  ;;  %v627_v57 = vpop.f32.mrf.mxu1 }
 0x19d   : > { %v637_v58 = vpop.f32.mrf.mxu2  ;;  %v647_v59 = vpop.f32.mrf.mxu3 }
 0x19e   : > { %v619_v60 = vpop.f32.mrf.mxu0  ;;  %v629_v61 = vpop.f32.mrf.mxu1 }
 0x19f   : > { %v1606_v62 = vpack.c.bf16 %v619_v60, %v617_v56  ;;  %v1616_v63 = vpack.c.bf16 %v629_v61, %v627_v57 }
 0x1a1   : > { %1607 = vst [vmem:[#allocation3] sm:$0xff] %v1606_v62  }
 0x1a2   : > { %1691 = vst [vmem:[#allocation3 + $0x10] sm:$0xff] %v1616_v63  }
 0x1a5   : > { %v639_v0 = vpop.f32.mrf.mxu2  ;;  %v649_v1 = vpop.f32.mrf.mxu3 }
 0x1a6   : > { %v1626_v2 = vpack.c.bf16 %v639_v0, %v637_v58  ;;  %v1636_v3 = vpack.c.bf16 %v649_v1, %v647_v59  ;;  %v622_v4 = vpop.f32.mrf.mxu0  ;;  %v632_v5 = vpop.f32.mrf.mxu1 }
 0x1a8   : > { %1693 = vst [vmem:[#allocation3 + $0x28] sm:$0xff] %v1626_v2  }
 0x1a9   : > { %1695 = vst [vmem:[#allocation3 + $0x30] sm:$0xff] %v1636_v3  }
 0x1ad   : > { %v642_v6 = vpop.f32.mrf.mxu2  ;;  %v652_v7 = vpop.f32.mrf.mxu3 }
 0x1ae   : > { %v624_v8 = vpop.f32.mrf.mxu0  ;;  %v634_v9 = vpop.f32.mrf.mxu1 }
 0x1af   : > { %v1611_v10 = vpack.c.bf16 %v624_v8, %v622_v4  ;;  %v1621_v11 = vpack.c.bf16 %v634_v9, %v632_v5 }
 0x1b1   : > { %1690 = vst [vmem:[#allocation3 + $0x18] sm:$0xff] %v1611_v10  }
 0x1b2   : > { %1692 = vst [vmem:[#allocation3 + $0x20] sm:$0xff] %v1621_v11  }
 0x1b5   : > { %v644_v12 = vpop.f32.mrf.mxu2  ;;  %v654_v13 = vpop.f32.mrf.mxu3 }
 0x1b6   : > { %v1631_v14 = vpack.c.bf16 %v644_v12, %v642_v6  ;;  %v1641_v15 = vpack.c.bf16 %v654_v13, %v652_v7 }
 0x1b8   : > { %1694 = vst [vmem:[#allocation3 + $0x8] sm:$0xff] %v1631_v14  }
 0x1b9   : > { %1696 = vst [vmem:[#allocation3 + $0x38] sm:$0xff] %v1641_v15  }
 0x1ba PF: > { %v1561_v17 = vld [vmem:[#allocation3 + $0x30] sm:$0xff]  ;;  %v1559_v19 = vld [vmem:[#allocation3 + $0x28] sm:$0xff]  ;;  %v1558_v20 = vld [vmem:[#allocation3 + $0x20] sm:$0xff]  ;;  %p1510_p4 = scmp.ge.s32.totalorder %s2045_s22, 3 }
 0x1bb   : > { %v1557_v21 = vld [vmem:[#allocation3 + $0x10] sm:$0xff]  ;;  %v1556_v22 = vld [vmem:[#allocation3 + $0x18] sm:$0xff]  ;;  %v1555_v23 = vld [vmem:[#allocation3] sm:$0xff] }
 0x1bc   : > { %v1547_v24 = vld [vmem:[%s2601_s1] sm:$0xff]  ;;  %v1549_v25 = vld [vmem:[%s2601_s1 + $0x10] sm:$0xff]  ;;  %v1548_v28 = vld [vmem:[%s2601_s1 + $0x8] sm:$0xff] }
 0x1bd   : > { %v1551_v26 = vld [vmem:[%s2601_s1 + $0x20] sm:$0xff]  ;;  %v1553_v27 = vld [vmem:[%s2601_s1 + $0x30] sm:$0xff]  ;;  %v1550_v29 = vld [vmem:[%s2601_s1 + $0x18] sm:$0xff] }
 0x1be   : > { %v1552_v30 = vld [vmem:[%s2601_s1 + $0x28] sm:$0xff]  ;;  %v1554_v31 = vld [vmem:[%s2601_s1 + $0x38] sm:$0xff]  ;;  %v1828_v32 = vld [vmem:[%s262_s17] ss:$0 sm:$0xff] }
 0x1bf   : > { %v1560_v18 = vld [vmem:[#allocation3 + $0x8] sm:$0xff] }
 0x1c0   : > { %v1562_v16 = vld [vmem:[#allocation3 + $0x38] sm:$0xff] }
 0x1c1   : > { %821 = vmatpush.bf16.msra.mxu0 %v1562_v16  ;;  %1752 = vmatpush.bf16.msra.mxu1 %v1562_v16 }
 0x1c2   : > { %1753 = vmatpush.bf16.msra.mxu2 %v1562_v16  ;;  %1754 = vmatpush.bf16.msra.mxu3 %v1562_v16 }
 0x1c5   : > { %822 = vmatpush.bf16.msra.mxu0 %v1561_v17  ;;  %1755 = vmatpush.bf16.msra.mxu1 %v1561_v17 }
 0x1c6   : > { %1756 = vmatpush.bf16.msra.mxu2 %v1561_v17  ;;  %1757 = vmatpush.bf16.msra.mxu3 %v1561_v17 }
 0x1c9   : > { %823 = vmatpush.bf16.msra.mxu0 %v1560_v18  ;;  %1758 = vmatpush.bf16.msra.mxu1 %v1560_v18 }
 0x1ca   : > { %1759 = vmatpush.bf16.msra.mxu2 %v1560_v18  ;;  %1760 = vmatpush.bf16.msra.mxu3 %v1560_v18 }
 0x1cd   : > { %824 = vmatpush.bf16.msra.mxu0 %v1559_v19  ;;  %1761 = vmatpush.bf16.msra.mxu1 %v1559_v19 }
 0x1ce   : > { %1762 = vmatpush.bf16.msra.mxu2 %v1559_v19  ;;  %1763 = vmatpush.bf16.msra.mxu3 %v1559_v19 }
 0x1d1   : > { %825 = vmatpush.bf16.msra.mxu0 %v1558_v20  ;;  %1764 = vmatpush.bf16.msra.mxu1 %v1558_v20 }
 0x1d2   : > { %1765 = vmatpush.bf16.msra.mxu2 %v1558_v20  ;;  %1766 = vmatpush.bf16.msra.mxu3 %v1558_v20 }
 0x1d5   : > { %826 = vmatpush.bf16.msra.mxu0 %v1557_v21  ;;  %1767 = vmatpush.bf16.msra.mxu1 %v1557_v21 }
 0x1d6   : > { %1768 = vmatpush.bf16.msra.mxu2 %v1557_v21  ;;  %1769 = vmatpush.bf16.msra.mxu3 %v1557_v21 }
 0x1d9   : > { %827 = vmatpush.bf16.msra.mxu0 %v1556_v22  ;;  %1770 = vmatpush.bf16.msra.mxu1 %v1556_v22 }
 0x1da   : > { %1771 = vmatpush.bf16.msra.mxu2 %v1556_v22  ;;  %1772 = vmatpush.bf16.msra.mxu3 %v1556_v22 }
 0x1dd   : > { %828 = vmatpush.bf16.msra.mxu0 %v1555_v23  ;;  %1773 = vmatpush.bf16.msra.mxu1 %v1555_v23 }
 0x1de   : > { %1774 = vmatpush.bf16.msra.mxu2 %v1555_v23  ;;  %1775 = vmatpush.bf16.msra.mxu3 %v1555_v23 }
 0x1e0   : > { %829 = vmatmul.bf16.vlgmr.msra.gmra.mxu0 %v1547_v24  ;;  %839 = vmatmul.bf16.vlgmr.msra.gmra.mxu1 %v1549_v25 }
 0x1e1   : > { %849 = vmatmul.bf16.vlgmr.msra.gmra.mxu2 %v1551_v26  ;;  %859 = vmatmul.bf16.vlgmr.msra.gmra.mxu3 %v1553_v27 }
 0x1f0   : > { %834 = vmatmul.bf16.gmra.mxu0 %v1548_v28  ;;  %844 = vmatmul.bf16.gmra.mxu1 %v1550_v29 }
 0x1f1   : > { %854 = vmatmul.bf16.gmra.mxu2 %v1552_v30  ;;  %864 = vmatmul.bf16.gmra.mxu3 %v1554_v31 }
 0x25d   : > { %v830_v33 = vpop.f32.mrf.mxu0  ;;  %v840_v34 = vpop.f32.mrf.mxu1 }
 0x25e   : > { %v2192_v35 = vadd.f32 %v1828_v32, %v830_v33  ;;  %v2194_v36 = vadd.f32 %v1828_v32, %v840_v34 }
 0x264   : > { %v850_v37 = vpop.f32.mrf.mxu2  ;;  %v860_v38 = vpop.f32.mrf.mxu3 }
 0x265   : > { %v2196_v39 = vadd.f32 %v1828_v32, %v850_v37  ;;  %v2198_v40 = vadd.f32 %v1828_v32, %v860_v38  ;;  %v832_v41 = vpop.f32.mrf.mxu0  ;;  %v842_v42 = vpop.f32.mrf.mxu1 }
 0x266   : > { %v2200_v43 = vadd.f32 %v1828_v32, %v832_v41  ;;  %v2202_v44 = vadd.f32 %v1828_v32, %v842_v42 }
 0x26c   : > { %v852_v45 = vpop.f32.mrf.mxu2  ;;  %v862_v46 = vpop.f32.mrf.mxu3 }
 0x26d   : > { %v2204_v47 = vadd.f32 %v1828_v32, %v852_v45  ;;  %v2206_v48 = vadd.f32 %v1828_v32, %v862_v46  ;;  %v835_v49 = vpop.f32.mrf.mxu0  ;;  %v845_v50 = vpop.f32.mrf.mxu1 }
 0x26e   : > { %v836_v51 = vadd.f32 %v1828_v32, %v835_v49  ;;  %v2208_v52 = vadd.f32 %v1828_v32, %v845_v50 }
 0x274   : > { %v855_v53 = vpop.f32.mrf.mxu2  ;;  %v865_v54 = vpop.f32.mrf.mxu3 }
 0x275   : > { %v2210_v55 = vadd.f32 %v1828_v32, %v855_v53  ;;  %v2212_v56 = vadd.f32 %v1828_v32, %v865_v54  ;;  %v837_v57 = vpop.f32.mrf.mxu0  ;;  %v847_v58 = vpop.f32.mrf.mxu1 }
 0x276   : > { %v838_v59 = vadd.f32 %v1828_v32, %v837_v57  ;;  %v2214_v60 = vadd.f32 %v1828_v32, %v847_v58 }
 0x279   : > { %873 = sbr.rel (%p1510_p4) target bundleno = 650 (0x28a), region = 60 }
 0x27c   : > { %v857_v61 = vpop.f32.mrf.mxu2  ;;  %v867_v62 = vpop.f32.mrf.mxu3 }
 0x27d   : > { %v2216_v63 = vadd.f32 %v1828_v32, %v857_v61  ;;  %v2218_v0 = vadd.f32 %v1828_v32, %v867_v62 }
 0x27e   : > { %v874_v1 = vmax.f32 %v2192_v35, 0.0  ;;  %v875_v2 = vmax.f32 %v2200_v43, 0.0  ;;  %v876_v3 = vmax.f32 %v836_v51, 0.0  ;;  %v877_v4 = vmax.f32 %v838_v59, 0.0 }
 0x27f   : > { %v878_v5 = vmax.f32 %v2194_v36, 0.0  ;;  %v879_v6 = vmax.f32 %v2202_v44, 0.0  ;;  %v880_v7 = vmax.f32 %v2208_v52, 0.0  ;;  %v881_v8 = vmax.f32 %v2214_v60, 0.0 }
 0x280   : > { %v1646_v9 = vpack.c.bf16 %v875_v2, %v874_v1  ;;  %v1651_v10 = vpack.c.bf16 %v877_v4, %v876_v3  ;;  %v882_v11 = vmax.f32 %v2196_v39, 0.0  ;;  %v883_v12 = vmax.f32 %v2204_v47, 0.0 }
 0x281   : > { %v1656_v13 = vpack.c.bf16 %v879_v6, %v878_v5  ;;  %v1661_v14 = vpack.c.bf16 %v881_v8, %v880_v7  ;;  %v884_v15 = vmax.f32 %v2210_v55, 0.0  ;;  %v885_v16 = vmax.f32 %v2216_v63, 0.0 }
 0x282   : > { %1647 = vst [vmem:[#allocation2 + $0x30] sm:$0xff] %v1646_v9   ;;  %v1666_v17 = vpack.c.bf16 %v883_v12, %v882_v11  ;;  %v886_v18 = vmax.f32 %v2198_v40, 0.0  ;;  %v887_v19 = vmax.f32 %v2206_v48, 0.0  ;;  %v888_v20 = vmax.f32 %v2212_v56, 0.0 }
 0x283   : > { %1697 = vst [vmem:[#allocation2] sm:$0xff] %v1651_v10   ;;  %v1671_v21 = vpack.c.bf16 %v885_v16, %v884_v15  ;;  %v889_v22 = vmax.f32 %v2218_v0, 0.0 }
 0x284   : > { %1698 = vst [vmem:[#allocation2 + $0x18] sm:$0xff] %v1656_v13   ;;  %v1676_v23 = vpack.c.bf16 %v887_v19, %v886_v18 }
 0x285   : > { %1699 = vst [vmem:[#allocation2 + $0x10] sm:$0xff] %v1661_v14   ;;  %v1681_v24 = vpack.c.bf16 %v889_v22, %v888_v20 }
 0x286   : > { %1700 = vst [vmem:[#allocation2 + $0x8] sm:$0xff] %v1666_v17  }
 0x287   : > { %1701 = vst [vmem:[#allocation2 + $0x20] sm:$0xff] %v1671_v21  }
 0x288   : > { %1702 = vst [vmem:[#allocation2 + $0x28] sm:$0xff] %v1676_v23  }
 0x289   : > { %1703 = vst [vmem:[#allocation2 + $0x38] sm:$0xff] %v1681_v24  }
 0x28a PF: > { %p1511_p5 = scmp.ne.s32.totalorder %s2045_s22, 3 }
 0x28c   : > { %925 = sbr.rel (%p1511_p5) target bundleno = 735 (0x2df), region = 64 }
 0x291   : > { %v926_v25 = vsub.f32 0.0, %v2192_v35  ;;  %v927_v26 = vsub.f32 0.0, %v2200_v43  ;;  %v928_v27 = vsub.f32 0.0, %v836_v51  ;;  %v929_v28 = vsub.f32 0.0, %v838_v59 }
 0x292   : > { %v930_v29 = vsub.f32 0.0, %v2194_v36  ;;  %v931_v30 = vsub.f32 0.0, %v2202_v44  ;;  %v932_v38 = vsub.f32 0.0, %v2208_v52  ;;  %v933_v35 = vsub.f32 0.0, %v2214_v60 }
 0x293   : > { %v942_v31 = vmul.f32 1.442695, %v926_v25  ;;  %v944_v32 = vmul.f32 1.442695, %v927_v26  ;;  %v946_v33 = vmul.f32 1.442695, %v928_v27 }
 0x294   : > { %v948_v34 = vmul.f32 1.442695, %v929_v28  ;;  %v950_v37 = vmul.f32 1.442695, %v930_v29  ;;  %v952_v41 = vmul.f32 1.442695, %v931_v30 }
 0x295   : > { %1829 = vpow2.f32 %v942_v31  ;;  %v954_v42 = vmul.f32 1.442695, %v932_v38  ;;  %v934_v36 = vsub.f32 0.0, %v2196_v39  ;;  %v935_v43 = vsub.f32 0.0, %v2204_v47 }
 0x296   : > { %1831 = vpow2.f32 %v944_v32  ;;  %v936_v45 = vsub.f32 0.0, %v2210_v55  ;;  %v956_v50 = vmul.f32 1.442695, %v933_v35  ;;  %v937_v39 = vsub.f32 0.0, %v2216_v63 }
 0x297   : > { %1833 = vpow2.f32 %v946_v33  ;;  %v958_v53 = vmul.f32 1.442695, %v934_v36  ;;  %v2250_v57 = vmul.f32 1.442695, %v935_v43  ;;  %v938_v47 = vsub.f32 0.0, %v2198_v40 }
 0x298   : > { %1835 = vpow2.f32 %v948_v34  ;;  %v2256_v59 = vmul.f32 1.442695, %v936_v45  ;;  %v939_v60 = vsub.f32 0.0, %v2206_v48 }
 0x299   : > { %1837 = vpow2.f32 %v950_v37 }
 0x29a   : > { %1839 = vpow2.f32 %v952_v41 }
 0x29b   : > { %v1830_v44 = vpop.eup %1829  ;;  %1841 = vpow2.f32 %v954_v42 }
 0x29c   : > { %v1832_v46 = vpop.eup %1831  ;;  %v2245_v49 = vadd.f32 1.0, %v1830_v44 }
 0x29d   : > { %v1834_v51 = vpop.eup %1833  ;;  %v2247_v52 = vadd.f32 1.0, %v1832_v46 }
 0x29e   : > { %v1836_v54 = vpop.eup %1835  ;;  %1843 = vrcp.f32 %v2245_v49  ;;  %v999_v55 = vand.u32 2147483647, %v2245_v49  ;;  %v1001_v62 = vand.u32 2147483648, %v2245_v49  ;;  %v2260_v1 = vadd.f32 1.0, %v1834_v51 }
 0x29f   : > { %v1838_v58 = vpop.eup %1837  ;;  %1845 = vrcp.f32 %v2247_v52  ;;  %v2262_v2 = vadd.f32 1.0, %v1836_v54  ;;  %v1014_v3 = vand.u32 2147483647, %v2247_v52  ;;  %v1016_v4 = vand.u32 2147483648, %v2247_v52 }
 0x2a0   : > { %v1840_v61 = vpop.eup %1839  ;;  %1847 = vpow2.f32 %v956_v50  ;;  %v2266_v5 = vadd.f32 1.0, %v1838_v58  ;;  %vm995_vm0 = vweird.f32 %v2245_v49  ;;  %vm1010_vm1 = vweird.f32 %v2247_v52 }
 0x2a1   : > { %1849 = vpow2.f32 %v958_v53  ;;  %v1031_v6 = vand.u32 2147483648, %v2260_v1  ;;  %v1842_v7 = vpop.eup %1841  ;;  %vm2272_vm2 = vcmp.eq.f32.partialorder %v999_v55, 8.507059e+37  ;;  %v1029_v9 = vand.u32 2147483647, %v2260_v1 }
 0x2a2   : > { %1851 = vrcp.f32 %v2260_v1  ;;  %v2278_v10 = vadd.f32 1.0, %v1840_v61  ;;  %v1002_v12 = vor.u32 1.1754944e-38, %v1001_v62  ;;  %v1044_v13 = vand.u32 2147483647, %v2262_v2 }
 0x2a3   : > { %1853 = vrcp.f32 %v2262_v2  ;;  %v1046_v14 = vand.u32 2147483648, %v2262_v2  ;;  %vm2284_vm3 = vcmp.eq.f32.partialorder %v1014_v3, 8.507059e+37  ;;  %v1017_v18 = vor.u32 1.1754944e-38, %v1016_v4 }
 0x2a4   : > { %v1844_v11 = vpop.eup %1843  ;;  %1855 = vrcp.f32 %v2266_v5  ;;  %vm1025_vm4 = vweird.f32 %v2260_v1  ;;  %v1032_v21 = vor.u32 1.1754944e-38, %v1031_v6  ;;  %vm1040_vm5 = vweird.f32 %v2262_v2 }
 0x2a5   : > { %v1846_v15 = vpop.eup %1845  ;;  %v991_v16 = vmul.f32 %v1844_v11, %v2245_v49  ;;  %v1061_v22 = vand.u32 2147483648, %v2266_v5  ;;  %vm996_vm6 = vweird.f32 %v1844_v11  ;;  %vm2292_vm7 = vcmp.eq.f32.partialorder %v1029_v9, 8.507059e+37 }
 0x2a6   : > { %v1848_v19 = vpop.eup %1847  ;;  %v1006_v20 = vmul.f32 %v1846_v15, %v2247_v52  ;;  %vm1055_vm8 = vweird.f32 %v2266_v5  ;;  %1857 = vrcp.f32 %v2278_v10  ;;  %vm1011_vm9 = vweird.f32 %v1846_v15  ;;  %vm2309_vm12 = vmor %vm995_vm0, %vm996_vm6 }
 0x2a7   : > { %v1850_v23 = vpop.eup %1849  ;;  %v992_v24 = vsub.f32 1.0, %v991_v16  ;;  %vm2298_vm10 = vcmp.eq.f32.partialorder %v1044_v13, 8.507059e+37  ;;  %v1047_v29 = vor.u32 1.1754944e-38, %v1046_v14  ;;  %v1059_v30 = vand.u32 2147483647, %v2266_v5  ;;  %vm2317_vm14 = vmor %vm1010_vm1, %vm1011_vm9 }
 0x2a8   : > { %v1852_v26 = vpop.eup %1851  ;;  %v1007_v27 = vsub.f32 1.0, %v1006_v20  ;;  %vm1070_vm11 = vweird.f32 %v2278_v10  ;;  %v1074_v34 = vand.u32 2147483647, %v2278_v10  ;;  %v1062_v42 = vor.u32 1.1754944e-38, %v1061_v22 }
 0x2a9   : > { %v1854_v31 = vpop.eup %1853  ;;  %v993_v32 = vmul.f32 %v1844_v11, %v992_v24  ;;  %v1021_v33 = vmul.f32 %v1852_v26, %v2260_v1  ;;  %vm1026_vm13 = vweird.f32 %v1852_v26  ;;  %v2322_v50 = vadd.f32 1.0, %v1842_v7 }
 0x2aa   : > { %v1856_v37 = vpop.eup %1855  ;;  %v1008_v41 = vmul.f32 %v1846_v15, %v1007_v27  ;;  %v1036_v35 = vmul.f32 %v1854_v31, %v2262_v2  ;;  %vm1041_vm15 = vweird.f32 %v1854_v31  ;;  %v2326_v52 = vadd.f32 1.0, %v1848_v19  ;;  %vm2335_vm1 = vmor %vm1025_vm4, %vm1026_vm13 }
 0x2ab   : > { %v994_v36 = vadd.f32 %v1844_v11, %v993_v32  ;;  %v1022_v44 = vsub.f32 1.0, %v1021_v33  ;;  %v1051_v45 = vmul.f32 %v1856_v37, %v2266_v5  ;;  %vm1056_vm0 = vweird.f32 %v1856_v37 }
 0x2ac   : > { %v1009_v46 = vadd.f32 %v1846_v15, %v1008_v41  ;;  %v1037_v49 = vsub.f32 1.0, %v1036_v35  ;;  %v1858_v51 = vpop.eup %1857  ;;  %v1076_v9 = vand.u32 2147483648, %v2278_v10  ;;  %1859 = vrcp.f32 %v2322_v50 }
 0x2ad   : > { %v998_v53 = vsel %vm2309_vm12, %v1844_v11, %v994_v36  ;;  %v1023_v54 = vmul.f32 %v1852_v26, %v1022_v44  ;;  %v1052_v58 = vsub.f32 1.0, %v1051_v45  ;;  %v1066_v4 = vmul.f32 %v1858_v51, %v2278_v10 }
 0x2ae   : > { %v1003_v55 = vsel %vm2272_vm2, %v1002_v12, %v998_v53  ;;  %v1013_v61 = vsel %vm2317_vm14, %v1846_v15, %v1009_v46  ;;  %v1038_v3 = vmul.f32 %v1854_v31, %v1037_v49  ;;  %vm2348_vm2 = vmor %vm1040_vm5, %vm1041_vm15  ;;  %vm1071_vm4 = vweird.f32 %v1858_v51 }
 0x2af   : > { %1230 = vst [vmem:[%s2605_s5] sm:$0xff] %v1003_v55  ;;  %v1018_v6 = vsel %vm2284_vm3, %v1017_v18, %v1013_v61  ;;  %v1024_v7 = vadd.f32 %v1852_v26, %v1023_v54  ;;  %v1053_v8 = vmul.f32 %v1856_v37, %v1052_v58  ;;  %vm2359_vm3 = vmor %vm1055_vm8, %vm1056_vm0  ;;  %v1067_v2 = vsub.f32 1.0, %v1066_v4 }
 0x2b0   : > { %1231 = vst [vmem:[%s2605_s5 + $0x8] sm:$0xff] %v1018_v6  ;;  %v1039_v11 = vadd.f32 %v1854_v31, %v1038_v3  ;;  %vm1060_vm5 = vcmp.eq.f32.partialorder %v1059_v30, 8.507059e+37  ;;  %v2366_v15 = vadd.f32 1.0, %v1850_v23  ;;  %1861 = vrcp.f32 %v2326_v52  ;;  %vm2382_vm6 = vmor %vm1070_vm11, %vm1071_vm4 }
 0x2b1   : > { %v1028_v13 = vsel %vm2335_vm1, %v1852_v26, %v1024_v7  ;;  %v1054_v14 = vadd.f32 %v1856_v37, %v1053_v8  ;;  %v1068_v17 = vmul.f32 %v1858_v51, %v1067_v2  ;;  %v1089_v22 = vand.u32 2147483647, %v2322_v50 }
 0x2b2   : > { %v1033_v16 = vsel %vm2292_vm7, %v1032_v21, %v1028_v13  ;;  %v1043_v5 = vsel %vm2348_vm2, %v1854_v31, %v1039_v11  ;;  %v1077_v21 = vor.u32 1.1754944e-38, %v1076_v9  ;;  %vm1075_vm7 = vcmp.eq.f32.partialorder %v1074_v34, 8.507059e+37  ;;  %v1860_v27 = vpop.eup %1859 }
 0x2b3   : > { %1232 = vst [vmem:[%s2605_s5 + $0x10] sm:$0xff] %v1033_v16  ;;  %v1048_v18 = vsel %vm2298_vm10, %v1047_v29, %v1043_v5  ;;  %v1058_v19 = vsel %vm2359_vm3, %v1856_v37, %v1054_v14  ;;  %v1069_v24 = vadd.f32 %v1858_v51, %v1068_v17  ;;  %v1091_v25 = vand.u32 2147483648, %v2322_v50 }
 0x2b4   : > { %1233 = vst [vmem:[%s2605_s5 + $0x18] sm:$0xff] %v1048_v18  ;;  %v1063_v23 = vsel %vm1060_vm5, %v1062_v42, %v1058_v19  ;;  %1863 = vrcp.f32 %v2366_v15  ;;  %v964_v10 = vmul.f32 1.442695, %v937_v39  ;;  %v966_v26 = vmul.f32 1.442695, %v938_v47 }
 0x2b5   : > { %1234 = vst [vmem:[%s2605_s5 + $0x20] sm:$0xff] %v1063_v23  ;;  %v1073_v28 = vsel %vm2382_vm6, %v1858_v51, %v1069_v24  ;;  %1865 = vpow2.f32 %v2250_v57  ;;  %v968_v29 = vmul.f32 1.442695, %v939_v60  ;;  %v940_v30 = vsub.f32 0.0, %v2212_v56 }
 0x2b6   : > { %v1078_v31 = vsel %vm1075_vm7, %v1077_v21, %v1073_v28  ;;  %v1081_v32 = vmul.f32 %v1860_v27, %v2322_v50  ;;  %vm1085_vm8 = vweird.f32 %v2322_v50  ;;  %vm2407_vm9 = vcmp.eq.f32.partialorder %v1089_v22, 8.507059e+37  ;;  %v1862_v40 = vpop.eup %1861 }
 0x2b7   : > { %1235 = vst [vmem:[%s2605_s5 + $0x28] sm:$0xff] %v1078_v31  ;;  %v1092_v57 = vor.u32 1.1754944e-38, %v1091_v25  ;;  %vm1100_vm10 = vweird.f32 %v2326_v52  ;;  %v1106_v48 = vand.u32 2147483648, %v2326_v52  ;;  %1867 = vpow2.f32 %v2256_v59 }
 0x2b8   : > { %v1082_v56 = vsub.f32 1.0, %v1081_v32  ;;  %vm1086_vm11 = vweird.f32 %v1860_v27  ;;  %v1096_v39 = vmul.f32 %v1862_v40, %v2326_v52  ;;  %1869 = vpow2.f32 %v964_v10 }
 0x2b9   : > { %v1104_v47 = vand.u32 2147483647, %v2326_v52  ;;  %1871 = vpow2.f32 %v966_v26  ;;  %v970_v60 = vmul.f32 1.442695, %v940_v30  ;;  %v941_v33 = vsub.f32 0.0, %v2218_v0  ;;  %vm2423_vm14 = vmor %vm1085_vm8, %vm1086_vm11 }
 0x2ba   : > { %v1864_v34 = vpop.eup %1863  ;;  %v1083_v37 = vmul.f32 %v1860_v27, %v1082_v56  ;;  %v1097_v38 = vsub.f32 1.0, %v1096_v39  ;;  %vm1101_vm12 = vweird.f32 %v1862_v40  ;;  %vm1115_vm13 = vweird.f32 %v2366_v15 }
 0x2bb   : > { %v1866_v41 = vpop.eup %1865  ;;  %v1107_v35 = vor.u32 1.1754944e-38, %v1106_v48  ;;  %v1111_v42 = vmul.f32 %v1864_v34, %v2366_v15  ;;  %v1119_v36 = vand.u32 2147483647, %v2366_v15  ;;  %v1121_v0 = vand.u32 2147483648, %v2366_v15  ;;  %vm2432_vm15 = vmor %vm1100_vm10, %vm1101_vm12 }
 0x2bc   : > { %v1084_v43 = vadd.f32 %v1860_v27, %v1083_v37  ;;  %v1098_v44 = vmul.f32 %v1862_v40, %v1097_v38  ;;  %v983_v45 = vadd.f32 1.0, %v1866_v41  ;;  %1873 = vpow2.f32 %v968_v29 }
 0x2bd   : > { %v1868_v46 = vpop.eup %1867  ;;  %v1112_v50 = vsub.f32 1.0, %v1111_v42  ;;  %vm1116_vm0 = vweird.f32 %v1864_v34  ;;  %1875 = vpow2.f32 %v970_v60  ;;  %v972_v51 = vmul.f32 1.442695, %v941_v33 }
 0x2be   : > { %v1870_v53 = vpop.eup %1869  ;;  %v1088_v54 = vsel %vm2423_vm14, %v1860_v27, %v1084_v43  ;;  %v1099_v58 = vadd.f32 %v1862_v40, %v1098_v44  ;;  %vm1105_vm1 = vcmp.eq.f32.partialorder %v1104_v47, 8.507059e+37  ;;  %1877 = vrcp.f32 %v983_v45  ;;  %vm2451_vm3 = vmor %vm1115_vm13, %vm1116_vm0 }
 0x2bf   : > { %v1872_v55 = vpop.eup %1871  ;;  %v1093_v61 = vsel %vm2407_vm9, %v1092_v57, %v1088_v54  ;;  %v1113_v52 = vmul.f32 %v1864_v34, %v1112_v50  ;;  %vm2440_vm2 = vcmp.eq.f32.partialorder %v1119_v36, 8.507059e+37  ;;  %v1122_v6 = vor.u32 1.1754944e-38, %v1121_v0 }
 0x2c0   : > { %1236 = vst [vmem:[%s2605_s5 + $0x30] sm:$0xff] %v1093_v61  ;;  %v1103_v3 = vsel %vm2432_vm15, %v1862_v40, %v1099_v58  ;;  %v984_v7 = vadd.f32 1.0, %v1868_v46  ;;  %v2455_v1 = vadd.f32 1.0, %v1870_v53  ;;  %v2457_v11 = vadd.f32 1.0, %v1872_v55 }
 0x2c1   : > { %v1108_v8 = vsel %vm1105_vm1, %v1107_v35, %v1103_v3  ;;  %v1114_v9 = vadd.f32 %v1864_v34, %v1113_v52  ;;  %1879 = vpow2.f32 %v972_v51  ;;  %v1134_v2 = vand.u32 2147483647, %v983_v45 }
 0x2c2   : > { %v1874_v12 = vpop.eup %1873  ;;  %1237 = vst [vmem:[%s2605_s5 + $0x38] sm:$0xff] %v1108_v8  ;;  %v1136_v13 = vand.u32 2147483648, %v983_v45  ;;  %1881 = vrcp.f32 %v984_v7  ;;  %v1149_v17 = vand.u32 2147483647, %v984_v7  ;;  %v1151_v18 = vand.u32 2147483648, %v984_v7 }
 0x2c3   : > { %v1876_v14 = vpop.eup %1875  ;;  %v1118_v15 = vsel %vm2451_vm3, %v1864_v34, %v1114_v9  ;;  %1883 = vrcp.f32 %v2455_v1  ;;  %vm1130_vm4 = vweird.f32 %v983_v45  ;;  %vm2471_vm5 = vcmp.eq.f32.partialorder %v1134_v2, 8.507059e+37 }
 0x2c4   : > { %v1878_v16 = vpop.eup %1877  ;;  %v1123_v5 = vsel %vm2440_vm2, %v1122_v6, %v1118_v15  ;;  %1885 = vrcp.f32 %v2457_v11  ;;  %v1137_v21 = vor.u32 1.1754944e-38, %v1136_v13  ;;  %vm1145_vm6 = vweird.f32 %v984_v7 }
 0x2c5   : > { %1238 = vst [vmem:[%s2605_s5 + $0x40] sm:$0xff] %v1123_v5  ;;  %v1126_v19 = vmul.f32 %v1878_v16, %v983_v45  ;;  %vm1131_vm7 = vweird.f32 %v1878_v16  ;;  %v2475_v24 = vadd.f32 1.0, %v1874_v12  ;;  %v2477_v25 = vadd.f32 1.0, %v1876_v14 }
 0x2c6   : > { %vm2479_vm8 = vcmp.eq.f32.partialorder %v1149_v17, 8.507059e+37  ;;  %v1152_v27 = vor.u32 1.1754944e-38, %v1151_v18  ;;  %vm1160_vm9 = vweird.f32 %v2455_v1  ;;  %v1164_v28 = vand.u32 2147483647, %v2455_v1  ;;  %vm2488_vm10 = vmor %vm1130_vm4, %vm1131_vm7 }
 0x2c7   : > { %v1880_v22 = vpop.eup %1879  ;;  %v1127_v23 = vsub.f32 1.0, %v1126_v19  ;;  %v1166_v32 = vand.u32 2147483648, %v2455_v1  ;;  %1887 = vrcp.f32 %v2475_v24  ;;  %v1179_v57 = vand.u32 2147483647, %v2457_v11 }
 0x2c8   : > { %v1882_v10 = vpop.eup %1881  ;;  %v1181_v48 = vand.u32 2147483648, %v2457_v11  ;;  %v2495_v56 = vadd.f32 1.0, %v1880_v22  ;;  %1889 = vrcp.f32 %v2477_v25  ;;  %vm2498_vm13 = vcmp.eq.f32.partialorder %v1164_v28, 8.507059e+37 }
 0x2c9   : > { %v1884_v29 = vpop.eup %1883  ;;  %v1128_v30 = vmul.f32 %v1878_v16, %v1127_v23  ;;  %v1141_v31 = vmul.f32 %v1882_v10, %v984_v7  ;;  %vm1146_vm11 = vweird.f32 %v1882_v10  ;;  %v1167_v59 = vor.u32 1.1754944e-38, %v1166_v32 }
 0x2ca   : > { %v1156_v40 = vmul.f32 %v1884_v29, %v2455_v1  ;;  %v1886_v39 = vpop.eup %1885  ;;  %vm1161_vm12 = vweird.f32 %v1884_v29  ;;  %vm1175_vm14 = vweird.f32 %v2457_v11  ;;  %vm2509_vm15 = vmor %vm1145_vm6, %vm1146_vm11  ;;  %vm2523_vm2 = vcmp.eq.f32.partialorder %v1179_v57, 8.507059e+37 }
 0x2cb   : > { %v1129_v47 = vadd.f32 %v1878_v16, %v1128_v30  ;;  %v1142_v60 = vsub.f32 1.0, %v1141_v31  ;;  %v1171_v37 = vmul.f32 %v1886_v39, %v2457_v11  ;;  %vm1176_vm0 = vweird.f32 %v1886_v39  ;;  %vm2519_vm1 = vmor %vm1160_vm9, %vm1161_vm12 }
 0x2cc   : > { %v1157_v33 = vsub.f32 1.0, %v1156_v40  ;;  %v1182_v49 = vor.u32 1.1754944e-38, %v1181_v48  ;;  %1891 = vrcp.f32 %v2495_v56  ;;  %v1196_v54 = vand.u32 2147483648, %v2475_v24  ;;  %vm2534_vm3 = vmor %vm1175_vm14, %vm1176_vm0 }
 0x2cd   : > { %v1133_v38 = vsel %vm2488_vm10, %v1878_v16, %v1129_v47  ;;  %v1143_v41 = vmul.f32 %v1882_v10, %v1142_v60  ;;  %v1172_v0 = vsub.f32 1.0, %v1171_v37  ;;  %v1888_v43 = vpop.eup %1887  ;;  %vm1190_vm4 = vweird.f32 %v2475_v24 }
 0x2ce   : > { %v1138_v35 = vsel %vm2471_vm5, %v1137_v21, %v1133_v38  ;;  %v1158_v36 = vmul.f32 %v1884_v29, %v1157_v33  ;;  %v1186_v53 = vmul.f32 %v1888_v43, %v2475_v24  ;;  %v1890_v58 = vpop.eup %1889  ;;  %vm1191_vm5 = vweird.f32 %v1888_v43 }
 0x2cf   : > { %1239 = vst [vmem:[%s2605_s5 + $0x48] sm:$0xff] %v1138_v35  ;;  %v1144_v44 = vadd.f32 %v1882_v10, %v1143_v41  ;;  %v1173_v51 = vmul.f32 %v1886_v39, %v1172_v0  ;;  %v1194_v52 = vand.u32 2147483647, %v2475_v24  ;;  %v1201_v1 = vmul.f32 %v1890_v58, %v2477_v25  ;;  %vm2562_vm7 = vmor %vm1190_vm4, %vm1191_vm5 }
 0x2d0   : > { %v1159_v50 = vadd.f32 %v1884_v29, %v1158_v36  ;;  %v1187_v6 = vsub.f32 1.0, %v1186_v53  ;;  %v1211_v8 = vand.u32 2147483648, %v2477_v25  ;;  %v1197_v12 = vor.u32 1.1754944e-38, %v1196_v54 }
 0x2d1   : > { %v1148_v55 = vsel %vm2509_vm15, %v1882_v10, %v1144_v44  ;;  %v1174_v4 = vadd.f32 %v1886_v39, %v1173_v51  ;;  %vm1205_vm6 = vweird.f32 %v2477_v25  ;;  %v1202_v15 = vsub.f32 1.0, %v1201_v1 }
 0x2d2   : > { %v1153_v62 = vsel %vm2479_vm8, %v1152_v27, %v1148_v55  ;;  %v1163_v3 = vsel %vm2519_vm1, %v1884_v29, %v1159_v50  ;;  %v1188_v11 = vmul.f32 %v1888_v43, %v1187_v6  ;;  %v1892_v2 = vpop.eup %1891  ;;  %vm1206_vm8 = vweird.f32 %v1890_v58 }
 0x2d3   : > { %1240 = vst [vmem:[%s2605_s5 + $0x50] sm:$0xff] %v1153_v62  ;;  %v1168_v7 = vsel %vm2498_vm13, %v1167_v59, %v1163_v3  ;;  %v1178_v9 = vsel %vm2534_vm3, %v1886_v39, %v1174_v4  ;;  %v1209_v16 = vand.u32 2147483647, %v2477_v25  ;;  %vm1195_vm9 = vcmp.eq.f32.partialorder %v1194_v52, 8.507059e+37  ;;  %vm1207_vm11 = vmor %vm1205_vm6, %vm1206_vm8 }
 0x2d4   : > { %1241 = vst [vmem:[%s2605_s5 + $0x58] sm:$0xff] %v1168_v7  ;;  %v1183_v13 = vsel %vm2523_vm2, %v1182_v49, %v1178_v9  ;;  %v1189_v5 = vadd.f32 %v1888_v43, %v1188_v11  ;;  %v1216_v17 = vmul.f32 %v1892_v2, %v2495_v56  ;;  %v1203_v18 = vmul.f32 %v1890_v58, %v1202_v15 }
 0x2d5   : > { %1242 = vst [vmem:[%s2605_s5 + $0x60] sm:$0xff] %v1183_v13  ;;  %v1212_v19 = vor.u32 1.1754944e-38, %v1211_v8  ;;  %vm1220_vm10 = vweird.f32 %v2495_v56  ;;  %v1226_v20 = vand.u32 2147483648, %v2495_v56  ;;  %vm1221_vm12 = vweird.f32 %v1892_v2 }
 0x2d6   : > { %v1193_v21 = vsel %vm2562_vm7, %v1888_v43, %v1189_v5  ;;  %v1217_v22 = vsub.f32 1.0, %v1216_v17  ;;  %v1224_v23 = vand.u32 2147483647, %v2495_v56  ;;  %v1204_v10 = vadd.f32 %v1890_v58, %v1203_v18  ;;  %vm1222_vm14 = vmor %vm1220_vm10, %vm1221_vm12 }
 0x2d7   : > { %v1198_v24 = vsel %vm1195_vm9, %v1197_v12, %v1193_v21  ;;  %vm1210_vm13 = vcmp.eq.f32.partialorder %v1209_v16, 8.507059e+37  ;;  %v1227_v28 = vor.u32 1.1754944e-38, %v1226_v20 }
 0x2d8   : > { %1243 = vst [vmem:[%s2605_s5 + $0x68] sm:$0xff] %v1198_v24  ;;  %v1218_v26 = vmul.f32 %v1892_v2, %v1217_v22  ;;  %v1208_v27 = vsel %vm1207_vm11, %v1890_v58, %v1204_v10  ;;  %vm1225_vm15 = vcmp.eq.f32.partialorder %v1224_v23, 8.507059e+37 }
 0x2d9   : > { %v1213_v29 = vsel %vm1210_vm13, %v1212_v19, %v1208_v27 }
 0x2da   : > { %v1219_v30 = vadd.f32 %v1892_v2, %v1218_v26  ;;  %1244 = vst [vmem:[%s2605_s5 + $0x70] sm:$0xff] %v1213_v29 }
 0x2dc   : > { %v1223_v25 = vsel %vm1222_vm14, %v1892_v2, %v1219_v30 }
 0x2dd   : > { %v1228_v31 = vsel %vm1225_vm15, %v1227_v28, %v1223_v25 }
 0x2de   : > { %1245 = vst [vmem:[%s2605_s5 + $0x78] sm:$0xff] %v1228_v31 }
 0x2df PF: > { %p16_p13 = scmp.ge.s32.totalorder %s2070_s30, 6   ;;  %s2657_s18 = smov %s1983_s19 }
 0x2e0   : > { %s2658_s19 = smov %s1987_s20  ;;  %s2659_s20 = smov %s2083_s10 }
 0x2e1   : > { %s2660_s21 = smov %s2070_s30  ;;  %18 = sbr.rel (!%p16_p13) target bundleno = 4 (0x4), region = 100 }
 0x2e6   :  { %1257 = vsyncpa [#allocation5], 1 }
 0x2e7   :  { %1259 = vsyncpa [#allocation5 + $0x1], 1 }
 0x2e8   :  { %1260 = vsyncpa [#allocation7], 1 }
 0x2e9   :  { %1262 = vsyncpa [#allocation7 + $0x1], 1 }

</bundles_post_ra>
